<compile_context>
chip_gen: v7x
topology: tpu7x:2x2x1
jax: 0.10.0
libtpu: 0.0.40
codegen_flags: <defaults>
</compile_context>

<pallas_src>
import jax
import jax.numpy as jnp
from jax.experimental import pallas as pl
from jax.experimental.pallas import tpu as pltpu


def _round_up(x: int, m: int) -> int:
    return ((x + m - 1) // m) * m


def _round_down(x: int, m: int) -> int:
    return (x // m) * m


def _score_kernel(x_ref, w1_ref, b1_ref, w2_ref, b2_ref, w3_ref, b3_ref, o_ref):
    # One row-tile of the input; all weights are fully resident in VMEM.
    x = x_ref[...]                       # native dtype (f32 / bf16) -> MXU
    in_dt = x.dtype

    # linear_1 + ReLU (f32 accumulation)
    h = jnp.dot(x, w1_ref[...], preferred_element_type=jnp.float32) + b1_ref[...]
    h = jnp.maximum(h, 0.0)

    # linear_2 + residual (residual add kept in f32)
    h = jnp.dot(h.astype(in_dt), w2_ref[...],
                preferred_element_type=jnp.float32) + b2_ref[...]
    h = h + x.astype(jnp.float32)

    # linear_3 (unpadded output; masked store when dim_out < 128 is cheap)
    out = jnp.dot(h.astype(in_dt), w3_ref[...],
                  preferred_element_type=jnp.float32) + b3_ref[...]
    o_ref[...] = out.astype(o_ref.dtype)


def score_layer_pallas(x, w1, b1, w2, b2, w3, b3, *, tm=4096):
    """x: (..., dim_in); weights in (in, out) layout; biases (out,)."""
    orig_shape = x.shape
    dim_in = orig_shape[-1]
    dim_hid = w1.shape[1]
    dim_out = w3.shape[1]
    assert w1.shape[0] == dim_in and w2.shape == (dim_hid, dim_hid)
    assert w3.shape[0] == dim_hid
    assert dim_in == dim_hid, "residual connection requires dim_in == dim_hid"

    x2 = x.reshape(-1, dim_in)
    rows = x2.shape[0]
    x_item = jnp.dtype(x.dtype).itemsize

    # dtype-native sublane multiple: 8 for f32, 16 for bf16, 32 for int8/fp8.
    sublane = max(8, 32 // max(1, x_item))

    # --- chip-generation awareness -------------------------------------------
    try:
        kind = jax.devices()[0].device_kind.lower()
    except Exception:
        kind = ""
    multi_core = "v7" in kind            # v7x: 2 TensorCores share "parallel" axis
    # v7x has 64 MiB physical VMEM per TC -> leave headroom; v5e/v6e have 128 MiB.
    vmem_cap = (48 if multi_core else 64) * 1024 * 1024

    # --- weight footprint (actual dtypes, no padding) -------------------------
    def _nbytes(a):
        return int(a.size) * jnp.dtype(a.dtype).itemsize
    weight_bytes = sum(_nbytes(a) for a in (w1, b1, w2, b2, w3, b3))
    single_buffer_weights = weight_bytes > (4 * 1024 * 1024)

    # --- row-tile selection ----------------------------------------------------
    # 2x double-buffered activation tiles + f32 intermediates + weights within
    # roughly half the VMEM budget.
    per_row_bytes = 2 * (dim_in + dim_out) * x_item + 3 * dim_hid * 4
    w_buf_bytes = (1 if single_buffer_weights else 2) * weight_bytes
    tile_budget = max(vmem_cap // 2 - w_buf_bytes, 1 * 1024 * 1024)
    tm_vmem = max(sublane, _round_down(tile_budget // per_row_bytes, sublane))

    tm_eff = min(_round_up(tm, sublane), tm_vmem, _round_up(rows, sublane))

    if multi_core and rows > sublane:
        # Give both TensorCores work; prefer an even grid-step count.
        tm_eff = min(tm_eff, _round_up(pl.cdiv(rows, 2), sublane))
        steps = pl.cdiv(rows, tm_eff)
        if steps > 1 and steps % 2 == 1:
            tm_cand = max(sublane, _round_up(pl.cdiv(rows, steps + 1), sublane))
            if pl.cdiv(rows, tm_cand) % 2 == 0:
                tm_eff = tm_cand
    tm_eff = max(sublane, tm_eff)

    grid = (pl.cdiv(rows, tm_eff),)      # ragged last block handled by Pallas

    # --- VMEM request / cost hints ---------------------------------------------
    act_tile_bytes = tm_eff * (dim_in + dim_out) * x_item
    scratch_bytes = 2 * tm_eff * dim_hid * 4          # f32 intermediates
    need = 2 * act_tile_bytes + scratch_bytes + w_buf_bytes
    vmem_limit = int(min(vmem_cap, max(2 * need, 16 * 1024 * 1024)))

    cost = pl.CostEstimate(
        flops=2 * rows * (dim_in * dim_hid + dim_hid * dim_hid + dim_hid * dim_out),
        transcendentals=0,
        bytes_accessed=rows * (dim_in + dim_out) * x_item + weight_bytes,
    )

    # Biases as (1, out) so they broadcast over the row tile inside the kernel.
    b1r = b1.reshape(1, dim_hid)
    b2r = b2.reshape(1, dim_hid)
    b3r = b3.reshape(1, dim_out)

    def _const_spec(shape):
        # Constant index_map -> never re-DMA'd across grid steps.  Only drop
        # to a single buffer when the weights are big enough to matter.
        if single_buffer_weights:
            return pl.BlockSpec(shape, lambda i: (0, 0),
                                pipeline_mode=pl.Buffered(1))
        return pl.BlockSpec(shape, lambda i: (0, 0))

    out = pl.pallas_call(
        _score_kernel,
        out_shape=jax.ShapeDtypeStruct((rows, dim_out), x.dtype),
        grid_spec=pltpu.PrefetchScalarGridSpec(
            num_scalar_prefetch=0,
            grid=grid,
            in_specs=[
                pl.BlockSpec((tm_eff, dim_in), lambda i: (i, 0)),   # x tile
                _const_spec((dim_in, dim_hid)),                     # w1 (full)
                _const_spec((1, dim_hid)),                          # b1
                _const_spec((dim_hid, dim_hid)),                    # w2 (full)
                _const_spec((1, dim_hid)),                          # b2
                _const_spec((dim_hid, dim_out)),                    # w3 (full)
                _const_spec((1, dim_out)),                          # b3
            ],
            out_specs=pl.BlockSpec((tm_eff, dim_out), lambda i: (i, 0)),
        ),
        compiler_params=pltpu.CompilerParams(
            dimension_semantics=("parallel",),
            vmem_limit_bytes=vmem_limit,
        ),
        cost_estimate=cost,
    )(x2, w1, b1r, w2, b2r, w3, b3r)

    return out.reshape(orig_shape[:-1] + (dim_out,))


def score_layer_ref(x, w1, b1, w2, b2, w3, b3):
    x0 = x.astype(jnp.float32)
    h = jnp.maximum(x0 @ w1 + b1, 0.0)
    h = h @ w2 + b2 + x0
    return (h @ w3 + b3).astype(x.dtype)


if __name__ == "__main__":
    # Small shapes implied by the module: a sequence of feature vectors.
    batch, seq = 2, 8
    dim_in = dim_hid = 32   # residual add requires dim_in == dim_hid
    dim_out = 8

    key = jax.random.PRNGKey(0)
    kx, k1, k2, k3 = jax.random.split(key, 4)

    # Deterministic synthetic init (the module's truncated-normal / zero inits
    # are a training detail; forward semantics are unchanged).
    x = jax.random.normal(kx, (batch, seq, dim_in), dtype=jnp.float32)
    w1 = jax.random.normal(k1, (dim_in, dim_hid), dtype=jnp.float32) * 0.1
    w2 = jax.random.normal(k2, (dim_hid, dim_hid), dtype=jnp.float32) * 0.1
    w3 = jax.random.normal(k3, (dim_hid, dim_out), dtype=jnp.float32) * 0.1
    b1 = jnp.zeros((dim_hid,), jnp.float32)   # Linear init sets biases to 0
    b2 = jnp.zeros((dim_hid,), jnp.float32)
    b3 = jnp.zeros((dim_out,), jnp.float32)

    out = score_layer_pallas(x, w1, b1, w2, b2, w3, b3)
    out = jax.block_until_ready(out)

    ref = score_layer_ref(x, w1, b1, w2, b2, w3, b3)
    assert out.shape == (batch, seq, dim_out)
    assert jnp.allclose(out, ref, atol=1e-5, rtol=1e-5), "mismatch vs reference"

    print("KERNEL_OK")
</pallas_src>

<mosaic_0001>
module attributes {stable_mosaic.version = 11 : i64} {
  func.func @_score_kernel(%arg0: i32, %arg1: memref<16x32xf32, #tpu.memory_space<vmem>>, %arg2: memref<32x32xf32, #tpu.memory_space<vmem>>, %arg3: memref<1x32xf32, #tpu.memory_space<vmem>>, %arg4: memref<32x32xf32, #tpu.memory_space<vmem>>, %arg5: memref<1x32xf32, #tpu.memory_space<vmem>>, %arg6: memref<32x8xf32, #tpu.memory_space<vmem>>, %arg7: memref<1x8xf32, #tpu.memory_space<vmem>>, %arg8: memref<16x8xf32, #tpu.memory_space<vmem>>) attributes {dimension_semantics = [#tpu.dimension_semantics<parallel>], iteration_bounds = array<i64: 1>, scalar_prefetch = 0 : i64, scratch_operands = 0 : i64, tpu.core_type = #tpu.core_type<tc>, window_params = [{transform_indices = @transform_0, window_bounds = array<i64: 16, 32>}, {pipeline_mode = #tpu.pipeline_mode<synchronous>, transform_indices = @transform_1, window_bounds = array<i64: 32, 32>}, {pipeline_mode = #tpu.pipeline_mode<synchronous>, transform_indices = @transform_2, window_bounds = array<i64: 1, 32>}, {pipeline_mode = #tpu.pipeline_mode<synchronous>, transform_indices = @transform_3, window_bounds = array<i64: 32, 32>}, {pipeline_mode = #tpu.pipeline_mode<synchronous>, transform_indices = @transform_4, window_bounds = array<i64: 1, 32>}, {pipeline_mode = #tpu.pipeline_mode<synchronous>, transform_indices = @transform_5, window_bounds = array<i64: 32, 8>}, {pipeline_mode = #tpu.pipeline_mode<synchronous>, transform_indices = @transform_6, window_bounds = array<i64: 1, 8>}, {transform_indices = @transform_7, window_bounds = array<i64: 16, 8>}]} {
    %c0 = arith.constant 0 : index
    %c0_0 = arith.constant 0 : index
    %0 = vector.load %arg1[%c0, %c0_0] : memref<16x32xf32, #tpu.memory_space<vmem>>, vector<16x32xf32>
    %c0_1 = arith.constant 0 : index
    %c0_2 = arith.constant 0 : index
    %1 = vector.load %arg2[%c0_1, %c0_2] : memref<32x32xf32, #tpu.memory_space<vmem>>, vector<32x32xf32>
    %cst = arith.constant dense<0.000000e+00> : vector<16x32xf32>
    %2 = tpu.matmul %0, %1, %cst {dimension_numbers = #tpu.dot_dimension_numbers<[1], [0], [0], [1], [0, 0, 1, 1], [], []>} : vector<16x32xf32>, vector<32x32xf32>, vector<16x32xf32> -> vector<16x32xf32>
    %c0_3 = arith.constant 0 : index
    %c0_4 = arith.constant 0 : index
    %3 = vector.load %arg3[%c0_3, %c0_4] : memref<1x32xf32, #tpu.memory_space<vmem>>, vector<1x32xf32>
    %4 = vector.broadcast %3 : vector<1x32xf32> to vector<16x32xf32>
    %5 = arith.addf %2, %4 : vector<16x32xf32>
    %cst_5 = arith.constant 0.000000e+00 : f32
    %6 = vector.broadcast %cst_5 : f32 to vector<16x32xf32>
    %7 = arith.maximumf %5, %6 : vector<16x32xf32>
    %c0_6 = arith.constant 0 : index
    %c0_7 = arith.constant 0 : index
    %8 = vector.load %arg4[%c0_6, %c0_7] : memref<32x32xf32, #tpu.memory_space<vmem>>, vector<32x32xf32>
    %cst_8 = arith.constant dense<0.000000e+00> : vector<16x32xf32>
    %9 = tpu.matmul %7, %8, %cst_8 {dimension_numbers = #tpu.dot_dimension_numbers<[1], [0], [0], [1], [0, 0, 1, 1], [], []>} : vector<16x32xf32>, vector<32x32xf32>, vector<16x32xf32> -> vector<16x32xf32>
    %c0_9 = arith.constant 0 : index
    %c0_10 = arith.constant 0 : index
    %10 = vector.load %arg5[%c0_9, %c0_10] : memref<1x32xf32, #tpu.memory_space<vmem>>, vector<1x32xf32>
    %11 = vector.broadcast %10 : vector<1x32xf32> to vector<16x32xf32>
    %12 = arith.addf %9, %11 : vector<16x32xf32>
    %13 = arith.addf %12, %0 : vector<16x32xf32>
    %c0_11 = arith.constant 0 : index
    %c0_12 = arith.constant 0 : index
    %14 = vector.load %arg6[%c0_11, %c0_12] : memref<32x8xf32, #tpu.memory_space<vmem>>, vector<32x8xf32>
    %cst_13 = arith.constant dense<0.000000e+00> : vector<16x8xf32>
    %15 = tpu.matmul %13, %14, %cst_13 {dimension_numbers = #tpu.dot_dimension_numbers<[1], [0], [0], [1], [0, 0, 1, 1], [], []>} : vector<16x32xf32>, vector<32x8xf32>, vector<16x8xf32> -> vector<16x8xf32>
    %c0_14 = arith.constant 0 : index
    %c0_15 = arith.constant 0 : index
    %16 = vector.load %arg7[%c0_14, %c0_15] : memref<1x8xf32, #tpu.memory_space<vmem>>, vector<1x8xf32>
    %17 = vector.broadcast %16 : vector<1x8xf32> to vector<16x8xf32>
    %18 = arith.addf %15, %17 : vector<16x8xf32>
    %c0_16 = arith.constant 0 : index
    %c0_17 = arith.constant 0 : index
    %19 = vector.load %arg8[%c0_16, %c0_17] : memref<16x8xf32, #tpu.memory_space<vmem>>, vector<16x8xf32>
    tpu.vector_store %arg8[%c0_16, %c0_17], %18 {strides = array<i32>} : memref<16x8xf32, #tpu.memory_space<vmem>>, vector<16x8xf32>,
    return
  }
  func.func @transform_0(%arg0: i32) -> (i32, i32) {
    %c0_i32 = arith.constant 0 : i32
    %c0_i32_0 = arith.constant 0 : i32
    return %arg0, %c0_i32 : i32, i32
  }
  func.func @transform_1(%arg0: i32) -> (i32, i32) {
    %c0_i32 = arith.constant 0 : i32
    %c0_i32_0 = arith.constant 0 : i32
    %c0_i32_1 = arith.constant 0 : i32
    return %c0_i32, %c0_i32_0 : i32, i32
  }
  func.func @transform_2(%arg0: i32) -> (i32, i32) {
    %c0_i32 = arith.constant 0 : i32
    %c0_i32_0 = arith.constant 0 : i32
    %c0_i32_1 = arith.constant 0 : i32
    return %c0_i32, %c0_i32_0 : i32, i32
  }
  func.func @transform_3(%arg0: i32) -> (i32, i32) {
    %c0_i32 = arith.constant 0 : i32
    %c0_i32_0 = arith.constant 0 : i32
    %c0_i32_1 = arith.constant 0 : i32
    return %c0_i32, %c0_i32_0 : i32, i32
  }
  func.func @transform_4(%arg0: i32) -> (i32, i32) {
    %c0_i32 = arith.constant 0 : i32
    %c0_i32_0 = arith.constant 0 : i32
    %c0_i32_1 = arith.constant 0 : i32
    return %c0_i32, %c0_i32_0 : i32, i32
  }
  func.func @transform_5(%arg0: i32) -> (i32, i32) {
    %c0_i32 = arith.constant 0 : i32
    %c0_i32_0 = arith.constant 0 : i32
    %c0_i32_1 = arith.constant 0 : i32
    return %c0_i32, %c0_i32_0 : i32, i32
  }
  func.func @transform_6(%arg0: i32) -> (i32, i32) {
    %c0_i32 = arith.constant 0 : i32
    %c0_i32_0 = arith.constant 0 : i32
    %c0_i32_1 = arith.constant 0 : i32
    return %c0_i32, %c0_i32_0 : i32, i32
  }
  func.func @transform_7(%arg0: i32) -> (i32, i32) {
    %c0_i32 = arith.constant 0 : i32
    %c0_i32_0 = arith.constant 0 : i32
    return %arg0, %c0_i32 : i32, i32
  }
}

</mosaic_0001>

<bundles_post_ra>
// kernel: tpu_custom_call.1
= control target key start
LH: loop header
LB: loop body
LE: loop exit
PB: predicated region body
PF: predicated region fallthrough
CT: control target
= control target key end

     0   :  { %12 = vsyncpa [#allocation3], 0  ;;  %s595_s0 = inlined_call_operand.hbm [shape: f32[16,32], index: 0, kind: input, shape index: {}]   ;;  %s596_s1 = inlined_call_operand.vmem [shape: f32[32,32], index: 1, kind: input, shape index: {}]   ;;  %s597_s2 = inlined_call_operand.vmem [shape: f32[1,32], index: 2, kind: input, shape index: {}]   ;;  %s598_s3 = inlined_call_operand.hbm [shape: f32[32,32], index: 3, kind: input, shape index: {}]   ;;  %s599_s4 = inlined_call_operand.vmem [shape: f32[1,32], index: 4, kind: input, shape index: {}]   ;;  %s600_s5 = inlined_call_operand.vmem [shape: f32[32,8], index: 5, kind: input, shape index: {}]   ;;  %s601_s6 = inlined_call_operand.vmem [shape: f32[1,8], index: 6, kind: input, shape index: {}]   ;;  %s602_s7 = inlined_call_operand.vmem [shape: f32[16,8], index: 7, kind: output, shape index: {}]  }
   0x1   :  { %13 = vsyncpa [#allocation5], 0  ;;  %s482_s24 = smov [#allocation2]   ;;  %s434_s28 = scalar_lea.hbm %s595_s0, 256 }
   0x2   :  { %s19_s25 = sshll.u32 %s482_s24, 4  ;;  %p435_p0 = scmp.ne.s32.totalorder %s595_s0, %s434_s28  ;;  %s20_s25 = int_to_ptr.vmem [resolvable:$true] %s19_s25 }
   0x3   :  { %p438_p1 = scmp.lt.u32.totalorder %s434_s28, %s595_s0 }
   0x5   :  { %p440_p2 = pnand %p438_p1, %p435_p0 }
   0x7   :  { %443 = shalt.err (!%p440_p2)
}
   0x8   :  { %s444_s10 = scalar_lea.vmem %s20_s25, 256  ;;  %p449_p4 = scmp.lt.s32.totalorder %s20_s25, %s20_s25 }
   0x9   :  { %p445_p3 = scmp.ne.s32.totalorder %s20_s25, %s444_s10  ;;  %p450_p5 = scmp.lt.s32.totalorder %s444_s10, %s444_s10 }
   0xb   :  { %p451_p6 = por %p450_p5, %p449_p4 }
   0xd   :  { %p452_p7 = pnand %p451_p6, %p445_p3 }
   0xf   :  { %455 = shalt.err (!%p452_p7)
}
  0x10   :  { %s483_s11 = smov 128   ;;  %s484_s12 = smov 8  }
  0x11   :  { %25 = dma.hbm_to_vmem [thread:$0]  %s595_s0, 256, %s20_s25, [#allocation3], %s483_s11, %s483_s11, %s484_s12  }
  0x12   :  { %s485_s15 = smov [#allocation4]   ;;  %s456_s19 = scalar_lea.hbm %s598_s3, 512 }
  0x13   :  { %s35_s16 = sshll.u32 %s485_s15, 4  ;;  %p457_p8 = scmp.ne.s32.totalorder %s598_s3, %s456_s19  ;;  %s36_s16 = int_to_ptr.vmem [resolvable:$true] %s35_s16 }
  0x14   :  { %p460_p9 = scmp.lt.u32.totalorder %s456_s19, %s598_s3 }
  0x16   :  { %p462_p10 = pnand %p460_p9, %p457_p8 }
  0x18   :  { %465 = shalt.err (!%p462_p10)
}
  0x19   :  { %s466_s24 = scalar_lea.vmem %s36_s16, 512  ;;  %p471_p12 = scmp.lt.s32.totalorder %s36_s16, %s36_s16 }
  0x1a   :  { %p467_p11 = scmp.ne.s32.totalorder %s36_s16, %s466_s24  ;;  %p472_p13 = scmp.lt.s32.totalorder %s466_s24, %s466_s24 }
  0x1c   :  { %p473_p0 = por %p472_p13, %p471_p12 }
  0x1e   :  { %p474_p1 = pnand %p473_p0, %p467_p11 }
  0x20   :  { %477 = shalt.err (!%p474_p1)
}
  0x21   :  { %41 = dma.hbm_to_vmem [thread:$0]  %s598_s3, 512, %s36_s16, [#allocation5], %s483_s11, %s483_s11, %s484_s12  }
  0x22   :  { %478 = dma.done.wait [#allocation3], 256  }
  0x23   :  { %479 = vsyncadd [#allocation3], 4294967040 }
  0x24   :  { %480 = dma.done.wait [#allocation5], 512  }
  0x25   :  { %481 = vsyncadd [#allocation5], 4294966784  ;;  %vm67_vm0 = vcmask 261120   ;;  %v56_v0 = vld [vmem:[%s596_s1] sm:$0xff]  ;;  %v57_v1 = vld [vmem:[%s596_s1 + $0x8] sm:$0xff]  ;;  %vm337_vm1 = vcmask 64512  }
  0x26   :  { %v58_v2 = vld [vmem:[%s596_s1 + $0x10] sm:$0xff]  ;;  %v406_v3 = vpack.c.bf16 %v57_v1, %v56_v0  ;;  %v59_v4 = vld [vmem:[%s596_s1 + $0x18] sm:$0xff]  ;;  %v54_v5 = vld [vmem:[#allocation2] sm:$0xff] }
  0x27   :  { %v410_v6 = vpack.c.bf16 %v59_v4, %v58_v2  ;;  %381 = vmatprep.mubr.msk.f32.mxu0 %vm67_vm0, %v54_v5  ;;  %v151_v7 = vld [vmem:[#allocation4] sm:$0xff]  ;;  %v152_v8 = vld [vmem:[#allocation4 + $0x8] sm:$0xff]  ;;  %v55_v10 = vld [vmem:[#allocation2 + $0x8] sm:$0xff] }
  0x28   :  { %407 = vmatprep.subr.bf16.mxu0 %v406_v3  ;;  %v414_v9 = vpack.c.bf16 %v152_v8, %v151_v7  ;;  %v153_v11 = vld [vmem:[#allocation4 + $0x10] sm:$0xff]  ;;  %v154_v12 = vld [vmem:[#allocation4 + $0x18] sm:$0xff]  ;;  %v247_v24 = vld [vmem:[%s600_s5 + $0x10] sm:$0xff] }
  0x29   :  { %409 = vmatpush3.bf16.msra.mxu0 %v406_v3  ;;  %v418_v13 = vpack.c.bf16 %v154_v12, %v153_v11  ;;  %v245_v14 = vld [vmem:[%s600_s5] sm:$0xff]  ;;  %v246_v15 = vld [vmem:[%s600_s5 + $0x8] sm:$0xff]  ;;  %v248_v25 = vld [vmem:[%s600_s5 + $0x18] sm:$0xff] }
  0x2a   :  { %411 = vmatprep.subr.bf16.mxu0 %v410_v6  ;;  %415 = vmatprep.subr.bf16.mxu1 %v414_v9  ;;  %v422_v16 = vpack.c.bf16 %v246_v15, %v245_v14  ;;  %v346_v17 = vld [vmem:[%s597_s2] ss:$0 sm:$0xff]  ;;  %v426_v26 = vpack.c.bf16 %v248_v25, %v247_v24 }
  0x2b   :  { %417 = vmatpush3.bf16.msra.mxu1 %v414_v9  ;;  %v349_v27 = vld [vmem:[%s599_s4] ss:$0 sm:$0xff] }
  0x2c   :  { %419 = vmatprep.subr.bf16.mxu1 %v418_v13  ;;  %v352_v34 = vld [vmem:[%s601_s6] ss:$0 sm:$0xff] }
  0x2d   :  { %413 = vmatpush3.bf16.msra.mxu0 %v410_v6 }
  0x2e   :  { %423 = vmatprep.subr.bf16.mxu0 %v422_v16 }
  0x2f   :  { %421 = vmatpush3.bf16.msra.mxu1 %v418_v13 }
  0x30   :  { %382 = vmatmul.mubr.msk.f32.vlgmr.msra.gmra.mrb[0].mxu0 %vm67_vm0, %v55_v10 }
  0x31   :  { %425 = vmatpush3.bf16.msra.mxu0 %v422_v16 }
  0x32   :  { %427 = vmatprep.subr.bf16.mxu0 %v426_v26 }
  0x35   :  { %429 = vmatpush3.bf16.msra.mxu0 %v426_v26 }
 0x103   :  { %v383_v18 = vpop.f32.mrb[0].mxu0 }
 0x104   :  { %v146_v19 = vadd.f32 %v383_v18, %v346_v17  ;;  %v140_v20 = vpop.f32.mrb[1].mxu0 }
 0x105   :  { %v141_v21 = vadd.f32 %v346_v17, %v140_v20 }
 0x106   :  { %v150_v23 = vmax.f32 %v146_v19, 0.0 }
 0x107   :  { %v149_v22 = vmax.f32 %v141_v21, 0.0 }
 0x109   :  { %392 = vmatprep.mubr.msk.f32.mxu1 %vm67_vm0, %v149_v22 }
 0x10a   :  { %393 = vmatmul.mubr.msk.f32.vlgmr.msra.gmra.mrb[0].mxu1 %vm67_vm0, %v150_v23 }
 0x1dd   :  { %v394_v28 = vpop.f32.mrb[0].mxu1 }
 0x1de   :  { %v240_v29 = vadd.f32 %v394_v28, %v349_v27  ;;  %v234_v30 = vpop.f32.mrb[1].mxu1 }
 0x1df   :  { %v235_v31 = vadd.f32 %v349_v27, %v234_v30 }
 0x1e0   :  { %v244_v33 = vadd.f32 %v240_v29, %v55_v10 }
 0x1e1   :  { %v243_v32 = vadd.f32 %v235_v31, %v54_v5 }
 0x1e3   :  { %403 = vmatprep.mubr.msk.f32.mxu0 %vm67_vm0, %v243_v32 }
 0x1e4   :  { %404 = vmatmul.mubr.msk.f32.vlgmr.msra.gmra.mrb[2].mxu0 %vm67_vm0, %v244_v33 }
 0x2b7   :  { %v405_v35 = vpop.f32.mrb[2].mxu0 }
 0x2b8   :  { %v334_v36 = vadd.f32 %v405_v35, %v352_v34  ;;  %v328_v37 = vpop.f32.mrb[3].mxu0 }
 0x2b9   :  { %v329_v38 = vadd.f32 %v352_v34, %v328_v37 }
 0x2ba   :  { %339 = vst.msk [vmem:[%s602_s7 + $0x8] sm:$0xff] %vm337_vm1, %v334_v36 }
 0x2bb   :  { %338 = vst.msk [vmem:[%s602_s7] sm:$0xff] %vm337_vm1, %v329_v38 }
 0x2bc   :  { %344 = vsyncpa [#allocation3], 1 }
 0x2bd   :  { %345 = vsyncpa [#allocation5], 1 }

</bundles_post_ra>
